<compile_context>
chip_gen: v6e
topology: v6e:2x2x1
jax: 0.10.0
libtpu: 0.0.40
codegen_flags: <defaults>
</compile_context>

<pallas_src>
import functools

import jax
import jax.numpy as jnp
from jax.experimental import pallas as pl
from jax.experimental.pallas import tpu as pltpu


def _round_up(v: int, m: int) -> int:
    return (v + m - 1) // m * m


def _vmem_capacity_bytes() -> int:
    # Physical VMEM per TensorCore; conservative fallback = v7x (64 MiB).
    try:
        return int(pltpu.get_tpu_info().vmem_capacity_bytes)
    except Exception:
        return 64 * 1024 * 1024


def _pick_tile_n(n_rows: int, c: int, itemsize: int, vmem_capacity: int) -> int:
    # On-chip bytes per tile row: 2x double-buffered input + ~3 f32 temporaries
    # (cast / shifted / exp) that the compiler materializes.
    per_row = c * (2 * itemsize + 3 * 4)
    budget = vmem_capacity // 2              # headroom for outputs / Mosaic scratch
    t = budget // max(1, per_row)
    t = max(8, min(4096, (t // 8) * 8))
    if n_rows > 16:
        # Keep >= 2 grid steps so both v7x TensorCores get work under "parallel".
        t = min(t, _round_up((n_rows + 1) // 2, 8))
    # Never let the block exceed the array's row extent (wrapper ensures n_rows >= 8).
    t = min(t, max(8, (n_rows // 8) * 8))
    return max(8, t)


def _label_smoothing_kernel(x_ref, tgt_ref, out_ref, *,
                            confidence: float, smooth_w: float, n_total: int):
    # x_ref: (TILE_N, C) logits (cast to f32 in-kernel so bf16 inputs halve DMA
    # bytes), tgt_ref: (TILE_N, 1) int32, out_ref: (1, 8, 128) f32 partial block.
    x = x_ref[...].astype(jnp.float32)
    tgt = tgt_ref[...]
    tn, c = x.shape

    # Rows past n_total (ragged last block) contain undefined data because x is
    # NOT padded in the wrapper; zero them before max/exp/sum so garbage cannot
    # produce NaN/Inf that would poison the reductions.
    rid = pl.program_id(0) * tn + jax.lax.broadcasted_iota(jnp.int32, (tn, 1), 0)
    valid = rid < n_total                                   # (TILE_N, 1)
    x = jnp.where(valid, x, 0.0)

    # Numerically stable logsumexp along the class (lane) axis.
    m = jnp.max(x, axis=-1, keepdims=True)                  # (TILE_N, 1)
    lse = jnp.log(jnp.sum(jnp.exp(x - m), axis=-1, keepdims=True))
    # TODO(synk): on v6e/v7x, bf16 exp on the EUP could halve EUP work if it ever
    # becomes the binding slot (needs accuracy re-check).

    # sum(w) == 1  =>  sum(w * x) = smooth_w * sum(x) + confidence * x[target];
    # no (TILE_N, C) weight matrix and no extra full-tile multiply pass.
    col = jax.lax.broadcasted_iota(jnp.int32, (tn, c), 1)
    sum_x = jnp.sum(x, axis=-1, keepdims=True)
    tgt_x = jnp.sum(jnp.where(col == tgt, x, 0.0), axis=-1, keepdims=True)

    row_loss = (m + lse) - (smooth_w * sum_x + confidence * tgt_x)
    row_loss = jnp.where(valid, row_loss, 0.0)

    # Lane-dense partial block (unmasked vst); wrapper reads element [0, 0].
    out_ref[...] = jnp.broadcast_to(jnp.sum(row_loss), out_ref.shape)


def label_smoothing_loss(x, target, smoothing: float = 0.1):
    """x: (N, C) float logits (f32 or bf16); target: (N,) integer class indices.

    Returns the scalar mean label-smoothed NLL loss (float32).
    """
    n, c = x.shape
    itemsize = jnp.dtype(x.dtype).itemsize
    vmem_cap = _vmem_capacity_bytes()

    # Only a sub-8-row batch is padded (negligible); large x is never copied or
    # padded in HBM — the ragged last block is masked inside the kernel instead.
    n_rows = max(n, 8)
    if n_rows != n:
        x = jnp.pad(x, ((0, n_rows - n), (0, 0)))

    tile_n = _pick_tile_n(n_rows, c, itemsize, vmem_cap)
    num_tiles = (n_rows + tile_n - 1) // tile_n

    # Pad only the (tiny) target vector so every block reads defined class ids.
    tgt = target.astype(jnp.int32)
    n_tgt = num_tiles * tile_n
    if n_tgt != n:
        tgt = jnp.pad(tgt, (0, n_tgt - n))
    tgt2d = tgt.reshape(n_tgt, 1)

    confidence = 1.0 - float(smoothing)
    smooth_w = float(smoothing) / float(c)
    kernel = functools.partial(_label_smoothing_kernel,
                               confidence=confidence, smooth_w=smooth_w, n_total=n)

    # VMEM budget from the f32 working set (not just the input itemsize):
    # 2x double-buffered input tile + ~3 f32 temporaries + slack, capped at 75%
    # of this generation's physical VMEM (~96 MiB v5e/v6e, ~48 MiB v7x).
    tile_in = tile_n * c * itemsize
    tile_f32 = tile_n * c * 4
    vmem_limit = 2 * tile_in + 3 * tile_f32 + (2 << 20)
    vmem_limit = int(min(max(vmem_limit, 16 << 20), (vmem_cap * 3) // 4))

    partials = pl.pallas_call(
        kernel,
        out_shape=jax.ShapeDtypeStruct((num_tiles, 8, 128), jnp.float32),
        grid_spec=pltpu.PrefetchScalarGridSpec(
            num_scalar_prefetch=0,
            grid=(num_tiles,),
            in_specs=[
                pl.BlockSpec((tile_n, c), lambda i: (i, 0)),
                pl.BlockSpec((tile_n, 1), lambda i: (i, 0)),
            ],
            out_specs=pl.BlockSpec((1, 8, 128), lambda i: (i, 0, 0)),
        ),
        compiler_params=pltpu.CompilerParams(
            dimension_semantics=("parallel",),
            vmem_limit_bytes=vmem_limit,
        ),
    )(x, tgt2d)

    # TODO(synk): for vocabulary-scale C, add a class-dim grid axis with a
    # streaming (flash-style) logsumexp instead of requiring full rows in VMEM.
    return jnp.sum(partials[:, 0, 0]) / jnp.float32(n)


def _reference(x, target, smoothing):
    logprobs = jax.nn.log_softmax(x.astype(jnp.float32), axis=-1)
    nll = -jnp.take_along_axis(logprobs, target[:, None], axis=-1)[:, 0]
    smooth = -jnp.mean(logprobs, axis=-1)
    return jnp.mean((1.0 - smoothing) * nll + smoothing * smooth)


if __name__ == "__main__":
    smoothing = 0.1

    # Case 1: small shape consistent with the module (batch=8, classes=32).
    kx, kt = jax.random.split(jax.random.PRNGKey(0))
    x = jax.random.normal(kx, (8, 32), dtype=jnp.float32)
    t = jax.random.randint(kt, (8,), 0, 32, dtype=jnp.int32)
    loss = jax.block_until_ready(label_smoothing_loss(x, t, smoothing))
    ref = _reference(x, t, smoothing)
    assert jnp.allclose(loss, ref, atol=1e-5, rtol=1e-5), (loss, ref)

    # Case 2: N not a multiple of the tile -> ragged last block, in-kernel mask.
    kx2, kt2 = jax.random.split(jax.random.PRNGKey(1))
    x2 = jax.random.normal(kx2, (13, 32), dtype=jnp.float32)
    t2 = jax.random.randint(kt2, (13,), 0, 32, dtype=jnp.int32)
    loss2 = jax.block_until_ready(label_smoothing_loss(x2, t2, smoothing))
    ref2 = _reference(x2, t2, smoothing)
    assert jnp.allclose(loss2, ref2, atol=1e-5, rtol=1e-5), (loss2, ref2)

    # Case 3: bf16 logits, C not a multiple of 128, >= 2 grid steps.
    kx3, kt3 = jax.random.split(jax.random.PRNGKey(2))
    x3 = jax.random.normal(kx3, (64, 100), dtype=jnp.bfloat16)
    t3 = jax.random.randint(kt3, (64,), 0, 100, dtype=jnp.int32)
    loss3 = jax.block_until_ready(label_smoothing_loss(x3, t3, smoothing))
    ref3 = _reference(x3, t3, smoothing)
    assert jnp.allclose(loss3, ref3, atol=1e-4, rtol=1e-4), (loss3, ref3)

    print("KERNEL_OK")
</pallas_src>

<mosaic_0001>
module attributes {stable_mosaic.version = 11 : i64} {
  func.func @_label_smoothing_kernel(%arg0: i32, %arg1: memref<8x32xf32, #tpu.memory_space<vmem>>, %arg2: memref<8x1xi32, #tpu.memory_space<vmem>>, %arg3: memref<1x8x128xf32, #tpu.memory_space<vmem>>) attributes {dimension_semantics = [#tpu.dimension_semantics<parallel>], iteration_bounds = array<i64: 1>, scalar_prefetch = 0 : i64, scratch_operands = 0 : i64, tpu.core_type = #tpu.core_type<tc>, window_params = [{transform_indices = @transform_0, window_bounds = array<i64: 8, 32>}, {transform_indices = @transform_1, window_bounds = array<i64: 8, 1>}, {transform_indices = @transform_2, window_bounds = array<i64: 1, 8, 128>}]} {
    %c0 = arith.constant 0 : index
    %c0_0 = arith.constant 0 : index
    %0 = vector.load %arg1[%c0, %c0_0] : memref<8x32xf32, #tpu.memory_space<vmem>>, vector<8x32xf32>
    %c0_1 = arith.constant 0 : index
    %c0_2 = arith.constant 0 : index
    %1 = vector.load %arg2[%c0_1, %c0_2] : memref<8x1xi32, #tpu.memory_space<vmem>>, vector<8x1xi32>
    %c8_i32 = arith.constant 8 : i32
    %2 = arith.muli %arg0, %c8_i32 : i32
    %3 = tpu.iota {dimensions = array<i32: 0>} : vector<8x1xi32>
    %4 = vector.broadcast %2 : i32 to vector<8x1xi32>
    %5 = arith.addi %4, %3 : vector<8x1xi32>
    %c8_i32_3 = arith.constant 8 : i32
    %6 = vector.broadcast %c8_i32_3 : i32 to vector<8x1xi32>
    %7 = arith.cmpi slt, %5, %6 : vector<8x1xi32>
    %cst = arith.constant 0.000000e+00 : f32
    %8 = vector.shape_cast %7 : vector<8x1xi1> to vector<8x1xi1>
    %9 = vector.broadcast %8 : vector<8x1xi1> to vector<8x32xi1>
    %10 = vector.broadcast %cst : f32 to vector<8x32xf32>
    %11 = arith.select %9, %0, %10 : vector<8x32xi1>, vector<8x32xf32>
    %cst_4 = arith.constant dense<0xFF800000> : vector<8xf32>
    %12 = vector.multi_reduction <maximumf>, %11, %cst_4 [1] : vector<8x32xf32> to vector<8xf32>
    %13 = vector.shape_cast %12 : vector<8xf32> to vector<8x1xf32>
    %14 = vector.broadcast %13 : vector<8x1xf32> to vector<8x32xf32>
    %15 = arith.subf %11, %14 : vector<8x32xf32>
    %16 = math.exp %15 : vector<8x32xf32>
    %cst_5 = arith.constant dense<0.000000e+00> : vector<8xf32>
    %17 = vector.multi_reduction <add>, %16, %cst_5 [1] : vector<8x32xf32> to vector<8xf32>
    %18 = vector.shape_cast %17 : vector<8xf32> to vector<8x1xf32>
    %19 = math.log %18 : vector<8x1xf32>
    %20 = tpu.iota {dimensions = array<i32: 1>} : vector<8x32xi32>
    %cst_6 = arith.constant dense<0.000000e+00> : vector<8xf32>
    %21 = vector.multi_reduction <add>, %11, %cst_6 [1] : vector<8x32xf32> to vector<8xf32>
    %22 = vector.shape_cast %21 : vector<8xf32> to vector<8x1xf32>
    %23 = vector.broadcast %1 : vector<8x1xi32> to vector<8x32xi32>
    %24 = arith.cmpi eq, %20, %23 : vector<8x32xi32>
    %cst_7 = arith.constant 0.000000e+00 : f32
    %25 = vector.broadcast %cst_7 : f32 to vector<8x32xf32>
    %26 = arith.select %24, %11, %25 : vector<8x32xi1>, vector<8x32xf32>
    %cst_8 = arith.constant dense<0.000000e+00> : vector<8xf32>
    %27 = vector.multi_reduction <add>, %26, %cst_8 [1] : vector<8x32xf32> to vector<8xf32>
    %28 = vector.shape_cast %27 : vector<8xf32> to vector<8x1xf32>
    %29 = arith.addf %13, %19 : vector<8x1xf32>
    %cst_9 = arith.constant 3.125000e-03 : f32
    %30 = vector.broadcast %cst_9 : f32 to vector<8x1xf32>
    %31 = arith.mulf %30, %22 : vector<8x1xf32>
    %cst_10 = arith.constant 0.899999976 : f32
    %32 = vector.broadcast %cst_10 : f32 to vector<8x1xf32>
    %33 = arith.mulf %32, %28 : vector<8x1xf32>
    %34 = arith.addf %31, %33 : vector<8x1xf32>
    %35 = arith.subf %29, %34 : vector<8x1xf32>
    %cst_11 = arith.constant 0.000000e+00 : f32
    %36 = vector.broadcast %cst_11 : f32 to vector<8x1xf32>
    %37 = arith.select %7, %35, %36 : vector<8x1xi1>, vector<8x1xf32>
    %38 = vector.shape_cast %37 : vector<8x1xf32> to vector<1x8x1xf32>
    %cst_12 = arith.constant dense<0.000000e+00> : vector<1xf32>
    %39 = vector.multi_reduction <add>, %38, %cst_12 [1, 2] : vector<1x8x1xf32> to vector<1xf32>
    %40 = vector.shape_cast %39 : vector<1xf32> to vector<1x1x1xf32>
    %41 = vector.extract %40[0, 0, 0] : f32 from vector<1x1x1xf32>
    %42 = vector.broadcast %41 : f32 to vector<1x8x128xf32>
    %c0_13 = arith.constant 0 : index
    %c0_14 = arith.constant 0 : index
    %c0_15 = arith.constant 0 : index
    %43 = vector.load %arg3[%c0_13, %c0_14, %c0_15] : memref<1x8x128xf32, #tpu.memory_space<vmem>>, vector<1x8x128xf32>
    tpu.vector_store %arg3[%c0_13, %c0_14, %c0_15], %42 {strides = array<i32>} : memref<1x8x128xf32, #tpu.memory_space<vmem>>, vector<1x8x128xf32>,
    return
  }
  func.func @transform_0(%arg0: i32) -> (i32, i32) {
    %c0_i32 = arith.constant 0 : i32
    %c0_i32_0 = arith.constant 0 : i32
    return %arg0, %c0_i32 : i32, i32
  }
  func.func @transform_1(%arg0: i32) -> (i32, i32) {
    %c0_i32 = arith.constant 0 : i32
    %c0_i32_0 = arith.constant 0 : i32
    return %arg0, %c0_i32 : i32, i32
  }
  func.func @transform_2(%arg0: i32) -> (i32, i32, i32) {
    %c0_i32 = arith.constant 0 : i32
    %c0_i32_0 = arith.constant 0 : i32
    %c0_i32_1 = arith.constant 0 : i32
    return %arg0, %c0_i32, %c0_i32_0 : i32, i32, i32
  }
}

</mosaic_0001>

<bundles_post_ra>
// kernel: tpu_custom_call.1
= control target key start
LH: loop header
LB: loop body
LE: loop exit
PB: predicated region body
PF: predicated region fallthrough
CT: control target
= control target key end

     0   :  { %vm23_vm0 = vcmask 261120   ;;  %s142_s0 = inlined_call_operand.vmem [shape: f32[8,32], index: 0, kind: input, shape index: {}]   ;;  %s143_s1 = inlined_call_operand.vmem [shape: s32[8,1], index: 1, kind: input, shape index: {}]   ;;  %s144_s2 = inlined_call_operand.hbm [shape: f32[1,8,128], index: 2, kind: output, shape index: {}]  }
   0x1   :  { %v12_v0 = vld [vmem:[%s142_s0] sm:$0xff] }
   0x2   :  { %7 = vsyncpa [#allocation3], 0  ;;  %v24_v1 = vsel %vm23_vm0, %v12_v0, -inf  ;;  %v112_v2 = vmov 0   ;;  %v13_v3 = vld [vmem:[%s143_s1] sm:$0xff]  ;;  %v35_v7 = vlaneseq  ;;  %v37_v12 = vsel %vm23_vm0, %v12_v0, 0.0 }
   0x3   :  { %85 = vset.pattern.permute.xlu0 %v112_v2  ;;  %vm54_vm2 = vcmask 7168   ;;  %s113_s0 = smov [#allocation2]  }
   0x4   :  { %25 = vmax.xlane.f32.xlu0 %v24_v1  ;;  %v36_v8 = vand.u32 127, %v35_v7  ;;  %s73_s1 = sshll.u32 %s113_s0, 4  ;;  %s74_s1 = int_to_ptr.vmem [resolvable:$true] %s73_s1 }
   0x5   :  { %s90_s14 = scalar_lea.vmem %s74_s1, 128  ;;  %p95_p1 = scmp.lt.s32.totalorder %s74_s1, %s74_s1 }
   0x6   :  { %p91_p0 = scmp.ne.s32.totalorder %s74_s1, %s90_s14  ;;  %p96_p2 = scmp.lt.s32.totalorder %s90_s14, %s90_s14 }
   0x8   :  { %p97_p3 = por %p96_p2, %p95_p1 }
   0xa   :  { %p98_p4 = pnand %p97_p3, %p91_p0 }
  0x1a   :  { %41 = vperm.xlu0 %85, %v13_v3  }
  0x8d   :  { %v26_v4 = vpop.xlane.xlu0 %25 }
  0x8e   :  { %v27_v5 = vsub.f32 %v12_v0, %v26_v4 }
  0x90   :  { %v28_v6 = vmul.f32 1.442695, %v27_v5 }
  0x92   :  { %86 = vpow2.f32 %v28_v6 }
  0x95   :  { %v42_v9 = vpop.permute.xlu0 %41 }
  0x96   :  { %vm43_vm1 = vcmp.eq.s32.totalorder %v36_v8, %v42_v9 }
  0x97   :  { %v44_v13 = vsel %vm43_vm1, %v12_v0, 0.0 }
  0x98   :  { %v45_v14 = vsel %vm23_vm0, %v44_v13, 0.0 }
  0x9f   :  { %v87_v10 = vpop.eup %86 }
  0xa0   :  { %v30_v11 = vsel %vm23_vm0, %v87_v10, 0.0 }
  0xa1   :  { %31 = vadd.xlane.f32.xlu1 %v30_v11 }
  0xa5   :  { %38 = vadd.xlane.f32.xlu1 %v37_v12 }
  0xa9   :  { %46 = vadd.xlane.f32.xlu1 %v45_v14 }
 0x12a   :  { %v32_v15 = vpop.xlane.xlu1 %31 }
 0x12b   :  { %88 = vlog2.f32 %v32_v15 }
 0x12e   :  { %v39_v16 = vpop.xlane.xlu1 %38 }
 0x12f   :  { %v49_v18 = vmul.f32 0.003125, %v39_v16 }
 0x132   :  { %v47_v17 = vpop.xlane.xlu1 %46 }
 0x133   :  { %v50_v19 = vmul.f32 0.9, %v47_v17 }
 0x135   :  { %v51_v22 = vadd.f32 %v50_v19, %v49_v18 }
 0x138   :  { %v89_v20 = vpop.eup %88 }
 0x139   :  { %v34_v21 = vmul.f32 0.6931472, %v89_v20 }
 0x13b   :  { %v48_v23 = vadd.f32 %v34_v21, %v26_v4 }
 0x13d   :  { %v52_v24 = vsub.f32 %v48_v23, %v51_v22 }
 0x13f   :  { %v55_v25 = vsel %vm54_vm2, %v52_v24, 0.0 }
 0x140   :  { %56 = vadd.xlane.f32.xlu1 %v55_v25 }
 0x1c9   :  { %v57_v26 = vpop.xlane.xlu1 %56 }
 0x1ca   :  { %v58_v27 = vrot.slane %v57_v26, 4 }
 0x1cc   :  { %v59_v28 = vadd.f32 %v58_v27, %v57_v26 }
 0x1ce   :  { %v60_v29 = vrot.slane %v59_v28, 2 }
 0x1d0   :  { %v61_v30 = vadd.f32 %v60_v29, %v59_v28 }
 0x1d2   :  { %v62_v31 = vrot.slane %v61_v30, 1 }
 0x1d4   :  { %v63_v32 = vadd.f32 %v62_v31, %v61_v30 }
 0x1d6   :  { %81 = vpush %v63_v32 }
 0x207   :  { %s82_s13 = spop %81 }
 0x208   :  { %v65_v33 = vstv %s82_s13 }
 0x209   :  { %66 = vst [vmem:[#allocation2] sm:$0xff] %v65_v33 }
 0x20a   :  { %101 = shalt.err (!%p98_p4)
}
 0x20b   :  { %76 = dma.vmem_to_hbm [thread:$0]  %s74_s1, 128, %s144_s2, [#allocation3]  }
 0x20c   :  { %110 = dma.done.wait [#allocation3], 128  }
 0x20d   :  { %111 = vsyncadd [#allocation3], 4294967168 }
 0x20e   :  { %80 = vsyncpa [#allocation3], 1 }

</bundles_post_ra>
